<compile_context>
chip_gen: v7x
topology: tpu7x:2x2x1
jax: 0.10.0
libtpu: 0.0.40
codegen_flags: <defaults>
</compile_context>

<pallas_src>
import jax
import jax.numpy as jnp
from jax.experimental import pallas as pl
from jax.experimental.pallas import tpu as pltpu

LANE = 128
SUBLANE = 8


# ----------------------------------------------------------------------------
# Pallas kernel: whole GNN forward on one grid point (graph batch is small and
# everything fits VMEM; larger N would need row-tiled BlockSpecs).
# ----------------------------------------------------------------------------
def gnn_kernel(a_ref, x_ref, w1_ref, w2_ref, wfc_ref, pool_ref, pvec_ref,
               out_ref):
    eps = jnp.float32(1e-5)

    a = a_ref[...]                      # (N, N)    bf16, normalized adjacency
    pv = pvec_ref[...]                  # (8, HP)   f32, packed small vectors
    b1, g1, be1 = pv[0:1], pv[1:2], pv[2:3]
    b2, g2, be2 = pv[3:4], pv[4:5], pv[5:6]
    bfc = pv[6:7]

    def bn_relu(h, gamma, beta):
        # One-pass batch statistics over the node axis (biased variance),
        # gamma * rsqrt(var + eps) folded into a single scale vector.
        mean = jnp.mean(h, axis=0, keepdims=True)
        mean_sq = jnp.mean(h * h, axis=0, keepdims=True)
        var = jnp.maximum(mean_sq - mean * mean, 0.0)
        scale = gamma * jax.lax.rsqrt(var + eps)      # EUP rsqrt, f32
        return jnp.maximum((h - mean) * scale + beta, 0.0)

    # --- GCNConv layer 1: A_norm @ (X @ W1) + b1 ----------------------------
    xw1 = jnp.dot(x_ref[...], w1_ref[...], preferred_element_type=jnp.float32)
    h1 = jnp.dot(a, xw1.astype(jnp.bfloat16),
                 preferred_element_type=jnp.float32) + b1
    h1 = bn_relu(h1, g1, be1)
    # dropout: identity (eval mode)

    # --- GCNConv layer 2: A_norm @ (h1 @ W2) + b2 ---------------------------
    hw2 = jnp.dot(h1.astype(jnp.bfloat16), w2_ref[...],
                  preferred_element_type=jnp.float32)
    h2 = jnp.dot(a, hw2.astype(jnp.bfloat16),
                 preferred_element_type=jnp.float32) + b2
    h2 = bn_relu(h2, g2, be2)
    # dropout: identity (eval mode)

    # --- global_mean_pool + fc ----------------------------------------------
    pooled = jnp.dot(pool_ref[...], h2.astype(jnp.bfloat16),
                     preferred_element_type=jnp.float32)
    out = jnp.dot(pooled.astype(jnp.bfloat16), wfc_ref[...],
                  preferred_element_type=jnp.float32)
    out_ref[...] = out + bfc            # lane-dense (GP, OP) full-tile store


# ----------------------------------------------------------------------------
# Wrapper: lane-dense zero padding + bf16 casts + packed param vector.
# ----------------------------------------------------------------------------
def _round_up(v, m):
    return ((v + m - 1) // m) * m


def _pad_to(arr, shape):
    pads = [(0, s - d) for d, s in zip(arr.shape, shape)]
    return jnp.pad(arr, pads)


def gnn_forward(a_norm, x, params, pool_mat):
    (w1, b1, g1, be1, w2, b2, g2, be2, wfc, bfc) = params
    n = x.shape[0]
    in_dim = x.shape[1]
    hid = w1.shape[1]
    out_dim = wfc.shape[1]
    g = pool_mat.shape[0]

    ip = _round_up(in_dim, LANE)        # lane-dense input channels
    hp = _round_up(hid, LANE)           # lane-dense hidden channels
    op = _round_up(out_dim, LANE)       # lane-dense output channels
    gp = _round_up(g, SUBLANE)          # sublane-aligned graph count

    # Zero padding keeps padded channels exactly zero through the whole net
    # (padded gamma/beta/bias rows/cols are zero).  bf16 operands feed the MXU;
    # accumulation stays f32.
    a_p = a_norm.astype(jnp.bfloat16)
    x_p = _pad_to(x, (n, ip)).astype(jnp.bfloat16)
    w1_p = _pad_to(w1, (ip, hp)).astype(jnp.bfloat16)
    w2_p = _pad_to(w2, (hp, hp)).astype(jnp.bfloat16)
    wfc_p = _pad_to(wfc, (hp, op)).astype(jnp.bfloat16)
    pool_p = _pad_to(pool_mat, (gp, n)).astype(jnp.bfloat16)

    # Pack the seven small per-channel vectors into a single (8, hp) f32 tile.
    pvec = jnp.zeros((8, hp), jnp.float32)
    for i, r in enumerate([b1, g1, be1, b2, g2, be2, bfc]):
        r = r.reshape(-1)
        pvec = pvec.at[i, : r.shape[0]].set(r.astype(jnp.float32))

    flops = int(2 * (n * ip * hp + n * n * hp + n * hp * hp + n * n * hp
                     + gp * n * hp + gp * hp * op))
    bytes_accessed = int(
        (a_p.size + x_p.size + w1_p.size + w2_p.size + wfc_p.size
         + pool_p.size) * 2 + pvec.size * 4 + gp * op * 4)

    vmem = pl.BlockSpec(memory_space=pltpu.MemorySpace.VMEM)
    out_p = pl.pallas_call(
        gnn_kernel,
        out_shape=jax.ShapeDtypeStruct((gp, op), jnp.float32),
        in_specs=[vmem] * 7,
        out_specs=vmem,
        compiler_params=pltpu.CompilerParams(
            # Explicit scoped-VMEM headroom for larger graphs; stays below
            # v7x's 64 MiB physical VMEM.
            vmem_limit_bytes=48 * 1024 * 1024),
        cost_estimate=pl.CostEstimate(flops=flops,
                                      transcendentals=2 * hp,
                                      bytes_accessed=bytes_accessed),
    )(a_p, x_p, w1_p, w2_p, wfc_p, pool_p, pvec)

    # Strip the lane/sublane padding back to the module's real output shape.
    return out_p[:g, :out_dim]


# ----------------------------------------------------------------------------
# Plain-JAX glue: densify edge_index -> symmetrically normalized adjacency
# (PyG GCNConv gcn_norm with self-loops and edge weights), build mean-pool
# matrix from the batch vector.
# ----------------------------------------------------------------------------
def build_gcn_adjacency(edge_index, edge_weight, num_nodes):
    row, col = edge_index[0], edge_index[1]          # source, target
    loop = jnp.arange(num_nodes, dtype=edge_index.dtype)
    row = jnp.concatenate([row, loop])
    col = jnp.concatenate([col, loop])
    w = jnp.concatenate([edge_weight,
                         jnp.ones((num_nodes,), dtype=edge_weight.dtype)])
    deg = jnp.zeros((num_nodes,), jnp.float32).at[col].add(w)
    deg_inv_sqrt = jnp.where(deg > 0, jax.lax.rsqrt(deg), 0.0)
    norm = deg_inv_sqrt[row] * w * deg_inv_sqrt[col]
    # aggregation target is `col`: A[col, row] += norm  ->  out = A @ (X W)
    a = jnp.zeros((num_nodes, num_nodes), jnp.float32).at[col, row].add(norm)
    return a


def build_pool_matrix(batch, num_graphs, num_nodes):
    onehot = (batch[None, :] == jnp.arange(num_graphs)[:, None]).astype(jnp.float32)
    counts = jnp.maximum(onehot.sum(axis=1, keepdims=True), 1.0)
    return onehot / counts                            # (G, N)


# ----------------------------------------------------------------------------
# Deterministic parameter init (shapes from GNN.__init__).
# ----------------------------------------------------------------------------
def init_params(key, input_dim, hidden_dim, output_dim):
    k = jax.random.split(key, 6)
    # GCNConv weights stored as (in, out) so the kernel does x @ W.
    w1 = jax.random.normal(k[0], (input_dim, hidden_dim), jnp.float32) * 0.1
    b1 = jnp.zeros((1, hidden_dim), jnp.float32)
    w2 = jax.random.normal(k[1], (hidden_dim, hidden_dim), jnp.float32) * 0.1
    b2 = jnp.zeros((1, hidden_dim), jnp.float32)
    # BatchNorm1d affine params
    g1 = jnp.ones((1, hidden_dim), jnp.float32)
    be1 = jnp.zeros((1, hidden_dim), jnp.float32)
    g2 = jnp.ones((1, hidden_dim), jnp.float32)
    be2 = jnp.zeros((1, hidden_dim), jnp.float32)
    # fc: nn.Linear(hidden_dim, output_dim) -> stored (in, out)
    wfc = jax.random.normal(k[2], (hidden_dim, output_dim), jnp.float32) * 0.1
    bfc = jax.random.normal(k[3], (1, output_dim), jnp.float32) * 0.01
    return (w1, b1, g1, be1, w2, b2, g2, be2, wfc, bfc)


if __name__ == "__main__":
    key = jax.random.PRNGKey(0)
    kx, ke, kw, kp = jax.random.split(key, 4)

    # Small synthetic graph batch: 2 graphs, 8 nodes each.
    num_nodes = 16
    num_graphs = 2
    num_edges = 32
    input_dim, hidden_dim, output_dim = 3, 16, 64

    x = jax.random.normal(kx, (num_nodes, input_dim), jnp.float32)
    edge_index = jax.random.randint(ke, (2, num_edges), 0, num_nodes, jnp.int32)
    edge_attr = jax.random.uniform(kw, (num_edges,), jnp.float32) + 0.5
    batch = jnp.repeat(jnp.arange(num_graphs, dtype=jnp.int32),
                       num_nodes // num_graphs)

    a_norm = build_gcn_adjacency(edge_index, edge_attr, num_nodes)
    pool_mat = build_pool_matrix(batch, num_graphs, num_nodes)
    params = init_params(kp, input_dim, hidden_dim, output_dim)

    out = gnn_forward(a_norm, x, params, pool_mat)
    out = jax.block_until_ready(out)
    assert out.shape == (num_graphs, output_dim)
    assert bool(jnp.all(jnp.isfinite(out)))
    print("KERNEL_OK")
</pallas_src>

<mosaic_0001>
module attributes {stable_mosaic.version = 11 : i64} {
  func.func @gnn_kernel(%arg0: memref<16x16xbf16, #tpu.memory_space<vmem>>, %arg1: memref<16x128xbf16, #tpu.memory_space<vmem>>, %arg2: memref<128x128xbf16, #tpu.memory_space<vmem>>, %arg3: memref<128x128xbf16, #tpu.memory_space<vmem>>, %arg4: memref<128x128xbf16, #tpu.memory_space<vmem>>, %arg5: memref<8x16xbf16, #tpu.memory_space<vmem>>, %arg6: memref<8x128xf32, #tpu.memory_space<vmem>>, %arg7: memref<8x128xf32, #tpu.memory_space<vmem>>) attributes {dimension_semantics = [], scalar_prefetch = 0 : i64, scratch_operands = 0 : i64, tpu.core_type = #tpu.core_type<tc>} {
    %c0 = arith.constant 0 : index
    %c0_0 = arith.constant 0 : index
    %0 = vector.load %arg0[%c0, %c0_0] : memref<16x16xbf16, #tpu.memory_space<vmem>>, vector<16x16xbf16>
    %c0_1 = arith.constant 0 : index
    %c0_2 = arith.constant 0 : index
    %1 = vector.load %arg6[%c0_1, %c0_2] : memref<8x128xf32, #tpu.memory_space<vmem>>, vector<8x128xf32>
    %2 = vector.extract_strided_slice %1 {offsets = [0, 0], sizes = [1, 128], strides = [1, 1]} : vector<8x128xf32> to vector<1x128xf32>
    %3 = vector.extract_strided_slice %1 {offsets = [1, 0], sizes = [1, 128], strides = [1, 1]} : vector<8x128xf32> to vector<1x128xf32>
    %4 = vector.extract_strided_slice %1 {offsets = [2, 0], sizes = [1, 128], strides = [1, 1]} : vector<8x128xf32> to vector<1x128xf32>
    %5 = vector.extract_strided_slice %1 {offsets = [3, 0], sizes = [1, 128], strides = [1, 1]} : vector<8x128xf32> to vector<1x128xf32>
    %6 = vector.extract_strided_slice %1 {offsets = [4, 0], sizes = [1, 128], strides = [1, 1]} : vector<8x128xf32> to vector<1x128xf32>
    %7 = vector.extract_strided_slice %1 {offsets = [5, 0], sizes = [1, 128], strides = [1, 1]} : vector<8x128xf32> to vector<1x128xf32>
    %8 = vector.extract_strided_slice %1 {offsets = [6, 0], sizes = [1, 128], strides = [1, 1]} : vector<8x128xf32> to vector<1x128xf32>
    %c0_3 = arith.constant 0 : index
    %c0_4 = arith.constant 0 : index
    %9 = vector.load %arg1[%c0_3, %c0_4] : memref<16x128xbf16, #tpu.memory_space<vmem>>, vector<16x128xbf16>
    %c0_5 = arith.constant 0 : index
    %c0_6 = arith.constant 0 : index
    %10 = vector.load %arg2[%c0_5, %c0_6] : memref<128x128xbf16, #tpu.memory_space<vmem>>, vector<128x128xbf16>
    %cst = arith.constant dense<0.000000e+00> : vector<16x128xf32>
    %11 = tpu.matmul %9, %10, %cst {dimension_numbers = #tpu.dot_dimension_numbers<[1], [0], [0], [1], [0, 0, 1, 1], [], []>} : vector<16x128xbf16>, vector<128x128xbf16>, vector<16x128xf32> -> vector<16x128xf32>
    %12 = arith.truncf %11 : vector<16x128xf32> to vector<16x128xbf16>
    %cst_7 = arith.constant dense<0.000000e+00> : vector<16x128xf32>
    %13 = tpu.matmul %0, %12, %cst_7 {dimension_numbers = #tpu.dot_dimension_numbers<[1], [0], [0], [1], [0, 0, 1, 1], [], []>} : vector<16x16xbf16>, vector<16x128xbf16>, vector<16x128xf32> -> vector<16x128xf32>
    %14 = vector.broadcast %2 : vector<1x128xf32> to vector<16x128xf32>
    %15 = arith.addf %13, %14 : vector<16x128xf32>
    %cst_8 = arith.constant dense<0.000000e+00> : vector<128xf32>
    %16 = vector.multi_reduction <add>, %15, %cst_8 [0] : vector<16x128xf32> to vector<128xf32>
    %17 = vector.shape_cast %16 : vector<128xf32> to vector<1x128xf32>
    %cst_9 = arith.constant 1.600000e+01 : f32
    %18 = vector.broadcast %cst_9 : f32 to vector<1x128xf32>
    %19 = arith.divf %17, %18 : vector<1x128xf32>
    %20 = arith.mulf %15, %15 : vector<16x128xf32>
    %cst_10 = arith.constant dense<0.000000e+00> : vector<128xf32>
    %21 = vector.multi_reduction <add>, %20, %cst_10 [0] : vector<16x128xf32> to vector<128xf32>
    %22 = vector.shape_cast %21 : vector<128xf32> to vector<1x128xf32>
    %cst_11 = arith.constant 1.600000e+01 : f32
    %23 = vector.broadcast %cst_11 : f32 to vector<1x128xf32>
    %24 = arith.divf %22, %23 : vector<1x128xf32>
    %25 = arith.mulf %19, %19 : vector<1x128xf32>
    %26 = arith.subf %24, %25 : vector<1x128xf32>
    %cst_12 = arith.constant 0.000000e+00 : f32
    %27 = vector.broadcast %cst_12 : f32 to vector<1x128xf32>
    %28 = arith.maximumf %26, %27 : vector<1x128xf32>
    %cst_13 = arith.constant 9.99999974E-6 : f32
    %29 = vector.broadcast %cst_13 : f32 to vector<1x128xf32>
    %30 = arith.addf %28, %29 : vector<1x128xf32>
    %31 = math.rsqrt %30 : vector<1x128xf32>
    %32 = arith.mulf %3, %31 : vector<1x128xf32>
    %33 = vector.broadcast %19 : vector<1x128xf32> to vector<16x128xf32>
    %34 = arith.subf %15, %33 : vector<16x128xf32>
    %35 = vector.broadcast %32 : vector<1x128xf32> to vector<16x128xf32>
    %36 = arith.mulf %34, %35 : vector<16x128xf32>
    %37 = vector.broadcast %4 : vector<1x128xf32> to vector<16x128xf32>
    %38 = arith.addf %36, %37 : vector<16x128xf32>
    %cst_14 = arith.constant 0.000000e+00 : f32
    %39 = vector.broadcast %cst_14 : f32 to vector<16x128xf32>
    %40 = arith.maximumf %38, %39 : vector<16x128xf32>
    %41 = arith.truncf %40 : vector<16x128xf32> to vector<16x128xbf16>
    %c0_15 = arith.constant 0 : index
    %c0_16 = arith.constant 0 : index
    %42 = vector.load %arg3[%c0_15, %c0_16] : memref<128x128xbf16, #tpu.memory_space<vmem>>, vector<128x128xbf16>
    %cst_17 = arith.constant dense<0.000000e+00> : vector<16x128xf32>
    %43 = tpu.matmul %41, %42, %cst_17 {dimension_numbers = #tpu.dot_dimension_numbers<[1], [0], [0], [1], [0, 0, 1, 1], [], []>} : vector<16x128xbf16>, vector<128x128xbf16>, vector<16x128xf32> -> vector<16x128xf32>
    %44 = arith.truncf %43 : vector<16x128xf32> to vector<16x128xbf16>
    %cst_18 = arith.constant dense<0.000000e+00> : vector<16x128xf32>
    %45 = tpu.matmul %0, %44, %cst_18 {dimension_numbers = #tpu.dot_dimension_numbers<[1], [0], [0], [1], [0, 0, 1, 1], [], []>} : vector<16x16xbf16>, vector<16x128xbf16>, vector<16x128xf32> -> vector<16x128xf32>
    %46 = vector.broadcast %5 : vector<1x128xf32> to vector<16x128xf32>
    %47 = arith.addf %45, %46 : vector<16x128xf32>
    %cst_19 = arith.constant dense<0.000000e+00> : vector<128xf32>
    %48 = vector.multi_reduction <add>, %47, %cst_19 [0] : vector<16x128xf32> to vector<128xf32>
    %49 = vector.shape_cast %48 : vector<128xf32> to vector<1x128xf32>
    %cst_20 = arith.constant 1.600000e+01 : f32
    %50 = vector.broadcast %cst_20 : f32 to vector<1x128xf32>
    %51 = arith.divf %49, %50 : vector<1x128xf32>
    %52 = arith.mulf %47, %47 : vector<16x128xf32>
    %cst_21 = arith.constant dense<0.000000e+00> : vector<128xf32>
    %53 = vector.multi_reduction <add>, %52, %cst_21 [0] : vector<16x128xf32> to vector<128xf32>
    %54 = vector.shape_cast %53 : vector<128xf32> to vector<1x128xf32>
    %cst_22 = arith.constant 1.600000e+01 : f32
    %55 = vector.broadcast %cst_22 : f32 to vector<1x128xf32>
    %56 = arith.divf %54, %55 : vector<1x128xf32>
    %57 = arith.mulf %51, %51 : vector<1x128xf32>
    %58 = arith.subf %56, %57 : vector<1x128xf32>
    %cst_23 = arith.constant 0.000000e+00 : f32
    %59 = vector.broadcast %cst_23 : f32 to vector<1x128xf32>
    %60 = arith.maximumf %58, %59 : vector<1x128xf32>
    %cst_24 = arith.constant 9.99999974E-6 : f32
    %61 = vector.broadcast %cst_24 : f32 to vector<1x128xf32>
    %62 = arith.addf %60, %61 : vector<1x128xf32>
    %63 = math.rsqrt %62 : vector<1x128xf32>
    %64 = arith.mulf %6, %63 : vector<1x128xf32>
    %65 = vector.broadcast %51 : vector<1x128xf32> to vector<16x128xf32>
    %66 = arith.subf %47, %65 : vector<16x128xf32>
    %67 = vector.broadcast %64 : vector<1x128xf32> to vector<16x128xf32>
    %68 = arith.mulf %66, %67 : vector<16x128xf32>
    %69 = vector.broadcast %7 : vector<1x128xf32> to vector<16x128xf32>
    %70 = arith.addf %68, %69 : vector<16x128xf32>
    %cst_25 = arith.constant 0.000000e+00 : f32
    %71 = vector.broadcast %cst_25 : f32 to vector<16x128xf32>
    %72 = arith.maximumf %70, %71 : vector<16x128xf32>
    %c0_26 = arith.constant 0 : index
    %c0_27 = arith.constant 0 : index
    %73 = vector.load %arg5[%c0_26, %c0_27] : memref<8x16xbf16, #tpu.memory_space<vmem>>, vector<8x16xbf16>
    %74 = arith.truncf %72 : vector<16x128xf32> to vector<16x128xbf16>
    %cst_28 = arith.constant dense<0.000000e+00> : vector<8x128xf32>
    %75 = tpu.matmul %73, %74, %cst_28 {dimension_numbers = #tpu.dot_dimension_numbers<[1], [0], [0], [1], [0, 0, 1, 1], [], []>} : vector<8x16xbf16>, vector<16x128xbf16>, vector<8x128xf32> -> vector<8x128xf32>
    %76 = arith.truncf %75 : vector<8x128xf32> to vector<8x128xbf16>
    %c0_29 = arith.constant 0 : index
    %c0_30 = arith.constant 0 : index
    %77 = vector.load %arg4[%c0_29, %c0_30] : memref<128x128xbf16, #tpu.memory_space<vmem>>, vector<128x128xbf16>
    %cst_31 = arith.constant dense<0.000000e+00> : vector<8x128xf32>
    %78 = tpu.matmul %76, %77, %cst_31 {dimension_numbers = #tpu.dot_dimension_numbers<[1], [0], [0], [1], [0, 0, 1, 1], [], []>} : vector<8x128xbf16>, vector<128x128xbf16>, vector<8x128xf32> -> vector<8x128xf32>
    %79 = vector.broadcast %8 : vector<1x128xf32> to vector<8x128xf32>
    %80 = arith.addf %78, %79 : vector<8x128xf32>
    %c0_32 = arith.constant 0 : index
    %c0_33 = arith.constant 0 : index
    %81 = vector.load %arg7[%c0_32, %c0_33] : memref<8x128xf32, #tpu.memory_space<vmem>>, vector<8x128xf32>
    tpu.vector_store %arg7[%c0_32, %c0_33], %80 {strides = array<i32>} : memref<8x128xf32, #tpu.memory_space<vmem>>, vector<8x128xf32>,
    return
  }
}

</mosaic_0001>

<bundles_post_ra>
// kernel: tpu_custom_call.1
= control target key start
LH: loop header
LB: loop body
LE: loop exit
PB: predicated region body
PF: predicated region fallthrough
CT: control target
= control target key end

     0   :  { %12 = vsyncpa [#allocation3], 0  ;;  %s1213_s0 = inlined_call_operand.hbm [shape: bf16[16,16], index: 0, kind: input, shape index: {}]   ;;  %s1214_s1 = inlined_call_operand.hbm [shape: bf16[16,128], index: 1, kind: input, shape index: {}]   ;;  %s1215_s2 = inlined_call_operand.hbm [shape: bf16[128,128], index: 2, kind: input, shape index: {}]   ;;  %s1216_s3 = inlined_call_operand.hbm [shape: bf16[128,128], index: 3, kind: input, shape index: {}]   ;;  %s1217_s4 = inlined_call_operand.hbm [shape: bf16[128,128], index: 4, kind: input, shape index: {}]   ;;  %s1218_s5 = inlined_call_operand.vmem [shape: bf16[8,16], index: 5, kind: input, shape index: {}]   ;;  %s1219_s6 = inlined_call_operand.vmem [shape: f32[8,128], index: 6, kind: input, shape index: {}]   ;;  %s1220_s7 = inlined_call_operand.hbm [shape: f32[8,128], index: 7, kind: output, shape index: {}]  }
   0x1   :  { %13 = vsyncpa [#allocation6], 0 }
   0x2   :  { %14 = vsyncpa [#allocation9], 0 }
   0x3   :  { %15 = vsyncpa [#allocation4], 0  ;;  %s992_s24 = smov [#allocation5]   ;;  %s993_s26 = smov [#allocation8]  }
   0x4   :  { %s33_s25 = sshll.u32 %s992_s24, 4  ;;  %s57_s27 = sshll.u32 %s993_s26, 4  ;;  %s34_s25 = int_to_ptr.vmem [resolvable:$true] %s33_s25  ;;  %s1042_s27 = int_to_ptr.vmem [resolvable:$true] %s57_s27 }
   0x5   :  { %s852_s30 = scalar_lea.hbm %s1214_s1, 128 }
   0x6   :  { %p853_p0 = scmp.ne.s32.totalorder %s1214_s1, %s852_s30  ;;  %p856_p1 = scmp.lt.u32.totalorder %s852_s30, %s1214_s1 }
   0x8   :  { %p858_p2 = pnand %p856_p1, %p853_p0 }
   0xa   :  { %861 = shalt.err (!%p858_p2)
}
   0xb   :  { %s862_s12 = scalar_lea.vmem %s34_s25, 128  ;;  %p867_p4 = scmp.lt.s32.totalorder %s34_s25, %s34_s25 }
   0xc   :  { %p863_p3 = scmp.ne.s32.totalorder %s34_s25, %s862_s12  ;;  %p868_p5 = scmp.lt.s32.totalorder %s862_s12, %s862_s12 }
   0xe   :  { %p869_p6 = por %p868_p5, %p867_p4 }
  0x10   :  { %p870_p7 = pnand %p869_p6, %p863_p3 }
  0x12   :  { %873 = shalt.err (!%p870_p7)
}
  0x13   :  { %s994_s13 = smov 64   ;;  %s995_s14 = smov 4  }
  0x14   :  { %39 = dma.hbm_to_vmem [thread:$0]  %s1214_s1, 128, %s34_s25, [#allocation6], %s994_s13, %s994_s13, %s995_s14  }
  0x15   :  { %s874_s19 = scalar_lea.hbm %s1216_s3, 1024 }
  0x16   :  { %p875_p8 = scmp.ne.s32.totalorder %s1216_s3, %s874_s19  ;;  %p878_p9 = scmp.lt.u32.totalorder %s874_s19, %s1216_s3 }
  0x18   :  { %p880_p10 = pnand %p878_p9, %p875_p8 }
  0x1a   :  { %883 = shalt.err (!%p880_p10)
}
  0x1b   :  { %s884_s24 = scalar_lea.vmem %s1042_s27, 1024  ;;  %p889_p12 = scmp.lt.s32.totalorder %s1042_s27, %s1042_s27 }
  0x1c   :  { %p885_p11 = scmp.ne.s32.totalorder %s1042_s27, %s884_s24  ;;  %p890_p13 = scmp.lt.s32.totalorder %s884_s24, %s884_s24 }
  0x1e   :  { %p891_p0 = por %p890_p13, %p889_p12 }
  0x20   :  { %p892_p1 = pnand %p891_p0, %p885_p11 }
  0x22   :  { %895 = shalt.err (!%p892_p1)
}
  0x23   :  { %63 = dma.hbm_to_vmem [thread:$0]  %s1216_s3, 1024, %s1042_s27, [#allocation9], %s994_s13, %s994_s13, %s995_s14  }
  0x24   :  { %s996_s26 = smov [#allocation2]   ;;  %s997_s29 = smov [#allocation7]  }
  0x25   :  { %s21_s28 = sshll.u32 %s996_s26, 4  ;;  %s45_s30 = sshll.u32 %s997_s29, 4  ;;  %s22_s28 = int_to_ptr.vmem [resolvable:$true] %s21_s28  ;;  %s1079_s30 = int_to_ptr.vmem [resolvable:$true] %s45_s30 }
  0x26   :  { %s896_s10 = scalar_lea.hbm %s1213_s0, 128 }
  0x27   :  { %p897_p2 = scmp.ne.s32.totalorder %s1213_s0, %s896_s10  ;;  %p900_p3 = scmp.lt.u32.totalorder %s896_s10, %s1213_s0 }
  0x29   :  { %p902_p4 = pnand %p900_p3, %p897_p2 }
  0x2b   :  { %905 = shalt.err (!%p902_p4)
}
  0x2c   :  { %s906_s3 = scalar_lea.vmem %s22_s28, 128  ;;  %p911_p6 = scmp.lt.s32.totalorder %s22_s28, %s22_s28 }
  0x2d   :  { %p907_p5 = scmp.ne.s32.totalorder %s22_s28, %s906_s3  ;;  %p912_p7 = scmp.lt.s32.totalorder %s906_s3, %s906_s3 }
  0x2f   :  { %p913_p8 = por %p912_p7, %p911_p6 }
  0x31   :  { %p914_p9 = pnand %p913_p8, %p907_p5 }
  0x33   :  { %917 = shalt.err (!%p914_p9)
}
  0x34   :  { %27 = dma.hbm_to_vmem [thread:$0]  %s1213_s0, 128, %s22_s28, [#allocation3], %s994_s13, %s994_s13, %s995_s14  }
  0x35   :  { %s918_s20 = scalar_lea.hbm %s1215_s2, 1024 }
  0x36   :  { %p919_p10 = scmp.ne.s32.totalorder %s1215_s2, %s918_s20  ;;  %p922_p11 = scmp.lt.u32.totalorder %s918_s20, %s1215_s2 }
  0x38   :  { %p924_p12 = pnand %p922_p11, %p919_p10 }
  0x3a   :  { %927 = shalt.err (!%p924_p12)
}
  0x3b   :  { %s928_s1 = scalar_lea.vmem %s1079_s30, 1024  ;;  %p933_p0 = scmp.lt.s32.totalorder %s1079_s30, %s1079_s30 }
  0x3c   :  { %p929_p13 = scmp.ne.s32.totalorder %s1079_s30, %s928_s1  ;;  %p934_p1 = scmp.lt.s32.totalorder %s928_s1, %s928_s1 }
  0x3e   :  { %p935_p2 = por %p934_p1, %p933_p0 }
  0x40   :  { %p936_p3 = pnand %p935_p2, %p929_p13 }
  0x42   :  { %939 = shalt.err (!%p936_p3)
}
  0x43   :  { %51 = dma.hbm_to_vmem [thread:$0]  %s1215_s2, 1024, %s1079_s30, [#allocation6], %s994_s13, %s994_s13, %s995_s14  }
  0x44   :  { %s998_s26 = smov [#allocation10]   ;;  %s940_s9 = scalar_lea.hbm %s1217_s4, 1024 }
  0x45   :  { %s69_s28 = sshll.u32 %s998_s26, 4  ;;  %p941_p4 = scmp.ne.s32.totalorder %s1217_s4, %s940_s9  ;;  %s70_s28 = int_to_ptr.vmem [resolvable:$true] %s69_s28 }
  0x46   :  { %p944_p5 = scmp.lt.u32.totalorder %s940_s9, %s1217_s4 }
  0x48   :  { %p946_p6 = pnand %p944_p5, %p941_p4 }
  0x4a   :  { %949 = shalt.err (!%p946_p6)
}
  0x4b   :  { %s950_s16 = scalar_lea.vmem %s70_s28, 1024  ;;  %p955_p8 = scmp.lt.s32.totalorder %s70_s28, %s70_s28 }
  0x4c   :  { %p951_p7 = scmp.ne.s32.totalorder %s70_s28, %s950_s16  ;;  %p956_p9 = scmp.lt.s32.totalorder %s950_s16, %s950_s16 }
  0x4e   :  { %p957_p10 = por %p956_p9, %p955_p8 }
  0x50   :  { %p958_p11 = pnand %p957_p10, %p951_p7 }
  0x52   :  { %961 = shalt.err (!%p958_p11)
}
  0x53   :  { %75 = dma.hbm_to_vmem [thread:$0]  %s1217_s4, 1024, %s70_s28, [#allocation9], %s994_s13, %s994_s13, %s995_s14  }
  0x54   :  { %984 = dma.done.wait [#allocation3], 128  }
  0x55   :  { %985 = vsyncadd [#allocation3], 4294967168 }
  0x56   :  { %986 = dma.done.wait [#allocation6], 1152  }
  0x57   :  { %987 = vsyncadd [#allocation6], 4294966144 }
  0x58   :  { %988 = dma.done.wait [#allocation9], 2048  }
  0x59   :  { %989 = vsyncadd [#allocation9], 4294965248  ;;  %v999_v0 = vmov 0.0   ;;  %vm1000_vm0 = vmmov 0   ;;  %v822_v1 = vld [vmem:[#allocation7] sm:$0xff]   ;;  %v823_v2 = vld [vmem:[#allocation7 + $0x8] sm:$0xff]   ;;  %v213_v24 = vlaneseq }
  0x5a   :  { %734 = vmatprep.subr.bf16.mxu0 %v999_v0  ;;  %750 = vmatprep.mubr.msk.bf16.mxu0 %vm1000_vm0, %v999_v0  ;;  %v824_v3 = vld [vmem:[#allocation7 + $0x10] sm:$0xff]   ;;  %v825_v4 = vld [vmem:[#allocation7 + $0x18] sm:$0xff]   ;;  %v826_v5 = vld [vmem:[#allocation7 + $0x20] sm:$0xff]   ;;  %vm222_vm1 = vcmask 130048   ;;  %s1001_s3 = smov [#allocation11]  }
  0x5b   :  { %754 = vmatprep.subr.bf16.mxu1 %v999_v0  ;;  %756 = vmatprep.mubr.msk.bf16.mxu1 %vm1000_vm0, %v999_v0  ;;  %v827_v6 = vld [vmem:[#allocation7 + $0x28] sm:$0xff]   ;;  %v828_v7 = vld [vmem:[#allocation7 + $0x30] sm:$0xff]   ;;  %v829_v8 = vld [vmem:[#allocation7 + $0x38] sm:$0xff]   ;;  %v1162_v25 = vshrl.u32 %v213_v24, 7  ;;  %s661_s27 = sshll.u32 %s1001_s3, 4  ;;  %s662_s27 = int_to_ptr.vmem [resolvable:$true] %s661_s27 }
  0x5c   :  { %735 = vmatpush3.bf16.msra.mxu0 %v822_v1  ;;  %v830_v9 = vld [vmem:[#allocation5] sm:$0xff]   ;;  %v1147_v15 = vld [vmem:[#allocation2] sm:$0xff]   ;;  %v832_v16 = vld [vmem:[#allocation8] sm:$0xff]   ;;  %p967_p13 = scmp.lt.s32.totalorder %s662_s27, %s662_s27 }
  0x5d   :  { %736 = vmatprep.subr.bf16.mxu0 %v999_v0  ;;  %v833_v17 = vld [vmem:[#allocation8 + $0x8] sm:$0xff]   ;;  %v834_v18 = vld [vmem:[#allocation8 + $0x10] sm:$0xff]   ;;  %v835_v19 = vld [vmem:[#allocation8 + $0x18] sm:$0xff]   ;;  %v215_v26 = vsub.s32 0, %v1162_v25  ;;  %v296_v59 = vsub.s32 1, %v1162_v25  ;;  %v302_v60 = vsub.s32 2, %v1162_v25 }
  0x5e   :  { %v836_v20 = vld [vmem:[#allocation8 + $0x20] sm:$0xff]   ;;  %v837_v21 = vld [vmem:[#allocation8 + $0x28] sm:$0xff]   ;;  %v838_v22 = vld [vmem:[#allocation8 + $0x30] sm:$0xff]  }
  0x5f   :  { %v839_v23 = vld [vmem:[#allocation8 + $0x38] sm:$0xff]   ;;  %v1168_v27 = vld [vmem:[%s1219_s6] sm:$0xff] }
  0x60   :  { %737 = vmatpush3.bf16.msra.mxu0 %v823_v2  ;;  %v216_v28 = vrot.slane %v1168_v27, %v215_v26  ;;  %v303_v1 = vrot.slane %v1168_v27, %v302_v60 }
  0x61   :  { %738 = vmatprep.subr.bf16.mxu0 %v999_v0 }
  0x64   :  { %739 = vmatpush3.bf16.msra.mxu0 %v824_v3 }
  0x65   :  { %740 = vmatprep.subr.bf16.mxu0 %v999_v0 }
  0x68   :  { %741 = vmatpush3.bf16.msra.mxu0 %v825_v4 }
  0x69   :  { %742 = vmatprep.subr.bf16.mxu0 %v999_v0 }
  0x6c   :  { %743 = vmatpush3.bf16.msra.mxu0 %v826_v5 }
  0x6d   :  { %744 = vmatprep.subr.bf16.mxu0 %v999_v0 }
  0x70   :  { %745 = vmatpush3.bf16.msra.mxu0 %v827_v6 }
  0x71   :  { %746 = vmatprep.subr.bf16.mxu0 %v999_v0 }
  0x74   :  { %747 = vmatpush3.bf16.msra.mxu0 %v828_v7 }
  0x75   :  { %748 = vmatprep.subr.bf16.mxu0 %v999_v0 }
  0x78   :  { %749 = vmatpush3.bf16.msra.mxu0 %v829_v8 }
  0x79   :  { %792 = vmatprep.subr.bf16.mxu0 %v999_v0 }
  0x7b   :  { %751 = vmatmul.mubr.bf16.vlgmr.msra.gmra.mrb[0].mxu0 %v830_v9 }
  0x7c   :  { %808 = vmatprep.mubr.msk.bf16.mxu0 %vm1000_vm0, %v999_v0 }
 0x14e   :  { %v205_v10 = vpop.f32.mrb[0].mxu0 }
 0x14f   :  { %v752_v11 = vpop.f32.mrb[1].mxu0 }
 0x150   :  { %v208_v12 = vpop.f32.mrb[2].mxu0 }
 0x151   :  { %v212_v13 = vpack.c.bf16 %v208_v12, %v205_v10  ;;  %v753_v14 = vpop.f32.mrb[3].mxu0 }
 0x152   :  { %v840_v14 = vld [vmem:[#allocation10] sm:$0xff]  }
 0x153   :  { %755 = vmatpush3.bf16.msra.mxu1 %v212_v13  ;;  %793 = vmatpush3.bf16.msra.mxu0 %v840_v14 }
 0x154   :  { %760 = vmatprep.subr.bf16.mxu1 %v999_v0  ;;  %794 = vmatprep.subr.bf16.mxu0 %v999_v0 }
 0x156   :  { %757 = vmatmul.mubr.msk.bf16.vlgmr.msra.gmra.mrb[0].mxu1 %vm222_vm1, %v1147_v15 }
 0x157   :  { %776 = vmatprep.mubr.msk.bf16.mxu1 %vm1000_vm0, %v999_v0  ;;  %761 = vmatpush3.bf16.msra.mxu1 %v832_v16  ;;  %v841_v16 = vld [vmem:[#allocation10 + $0x8] sm:$0xff]  }
 0x158   :  { %762 = vmatprep.subr.bf16.mxu1 %v999_v0  ;;  %795 = vmatpush3.bf16.msra.mxu0 %v841_v16 }
 0x159   :  { %796 = vmatprep.subr.bf16.mxu0 %v999_v0 }
 0x15b   :  { %763 = vmatpush3.bf16.msra.mxu1 %v833_v17  ;;  %v842_v17 = vld [vmem:[#allocation10 + $0x10] sm:$0xff]  }
 0x15c   :  { %764 = vmatprep.subr.bf16.mxu1 %v999_v0  ;;  %797 = vmatpush3.bf16.msra.mxu0 %v842_v17 }
 0x15d   :  { %798 = vmatprep.subr.bf16.mxu0 %v999_v0 }
 0x15f   :  { %765 = vmatpush3.bf16.msra.mxu1 %v834_v18  ;;  %v843_v18 = vld [vmem:[#allocation10 + $0x18] sm:$0xff]  }
 0x160   :  { %766 = vmatprep.subr.bf16.mxu1 %v999_v0  ;;  %799 = vmatpush3.bf16.msra.mxu0 %v843_v18 }
 0x161   :  { %800 = vmatprep.subr.bf16.mxu0 %v999_v0 }
 0x163   :  { %767 = vmatpush3.bf16.msra.mxu1 %v835_v19  ;;  %v844_v19 = vld [vmem:[#allocation10 + $0x20] sm:$0xff]  }
 0x164   :  { %768 = vmatprep.subr.bf16.mxu1 %v999_v0  ;;  %801 = vmatpush3.bf16.msra.mxu0 %v844_v19 }
 0x165   :  { %802 = vmatprep.subr.bf16.mxu0 %v999_v0 }
 0x167   :  { %769 = vmatpush3.bf16.msra.mxu1 %v836_v20  ;;  %v846_v20 = vld [vmem:[#allocation10 + $0x30] sm:$0xff]  }
 0x168   :  { %770 = vmatprep.subr.bf16.mxu1 %v999_v0 }
 0x16b   :  { %771 = vmatpush3.bf16.msra.mxu1 %v837_v21  ;;  %v417_v21 = vsub.s32 3, %v1162_v25 }
 0x16c   :  { %772 = vmatprep.subr.bf16.mxu1 %v999_v0 }
 0x16f   :  { %773 = vmatpush3.bf16.msra.mxu1 %v838_v22  ;;  %v418_v22 = vrot.slane %v1168_v27, %v417_v21 }
 0x170   :  { %774 = vmatprep.subr.bf16.mxu1 %v999_v0 }
 0x173   :  { %775 = vmatpush3.bf16.msra.mxu1 %v839_v23 }
 0x174   :  { %780 = vmatprep.subr.bf16.mxu1 %v999_v0 }
 0x229   :  { %v260_v29 = vpop.f32.mrb[0].mxu1 }
 0x22a   :  { %v261_v30 = vadd.f32 %v260_v29, %v216_v28  ;;  %v758_v31 = vpop.f32.mrb[1].mxu1 }
 0x22b   :  { %v263_v32 = vpop.f32.mrb[2].mxu1 }
 0x22c   :  { %v264_v33 = vadd.f32 %v263_v32, %v216_v28  ;;  %v759_v34 = vpop.f32.mrb[3].mxu1  ;;  %v276_v35 = vmul.f32 %v261_v30, %v261_v30 }
 0x22e   :  { %v267_v36 = vadd.f32 %v264_v33, %v261_v30  ;;  %v277_v37 = vmul.f32 %v264_v33, %v264_v33 }
 0x230   :  { %v268_v38 = vrot.slane %v267_v36, 4  ;;  %v278_v39 = vadd.f32 %v277_v37, %v276_v35 }
 0x232   :  { %v269_v40 = vadd.f32 %v268_v38, %v267_v36  ;;  %v279_v41 = vrot.slane %v278_v39, 4 }
 0x234   :  { %v270_v42 = vrot.slane %v269_v40, 2  ;;  %v280_v43 = vadd.f32 %v279_v41, %v278_v39 }
 0x236   :  { %v271_v44 = vadd.f32 %v270_v42, %v269_v40  ;;  %v281_v45 = vrot.slane %v280_v43, 2 }
 0x238   :  { %v272_v46 = vrot.slane %v271_v44, 1  ;;  %v282_v47 = vadd.f32 %v281_v45, %v280_v43 }
 0x23a   :  { %v273_v48 = vadd.f32 %v272_v46, %v271_v44  ;;  %v283_v49 = vrot.slane %v282_v47, 1 }
 0x23c   :  { %v275_v50 = vmul.f32 0.0625, %v273_v48  ;;  %v284_v51 = vadd.f32 %v283_v49, %v282_v47 }
 0x23e   :  { %v285_v52 = vmul.f32 0.0625, %v284_v51  ;;  %v286_v53 = vmul.f32 %v275_v50, %v275_v50  ;;  %v292_v54 = vsub.f32 %v261_v30, %v275_v50  ;;  %v293_v55 = vsub.f32 %v264_v33, %v275_v50 }
 0x240   :  { %v287_v56 = vsub.f32 %v285_v52, %v286_v53 }
 0x242   :  { %v288_v57 = vmax.f32 %v287_v56, 0.0 }
 0x244   :  { %v289_v58 = vadd.f32 1e-05, %v288_v57 }
 0x246   :  { %848 = vrsqrt.f32 %v289_v58 }
 0x250   :  { %v849_v61 = vpop.eup %848 }
 0x251   :  { %v291_v62 = vmul.f32 %v849_v61, %v1168_v27 }
 0x253   :  { %v297_v63 = vrot.slane %v291_v62, %v296_v59 }
 0x255   :  { %v298_v2 = vmul.f32 %v297_v63, %v292_v54  ;;  %v299_v3 = vmul.f32 %v297_v63, %v293_v55  ;;  %v488_v54 = vsub.s32 4, %v1162_v25  ;;  %v494_v55 = vsub.s32 5, %v1162_v25 }
 0x257   :  { %v305_v4 = vadd.f32 %v303_v1, %v299_v3  ;;  %v304_v5 = vadd.f32 %v303_v1, %v298_v2  ;;  %v495_v59 = vrot.slane %v1168_v27, %v494_v55 }
 0x259   :  { %v306_v6 = vmax.f32 %v304_v5, 0.0  ;;  %v307_v7 = vmax.f32 %v305_v4, 0.0  ;;  %v500_v4 = vld [vmem:[%s1218_s5] sm:$0xf]  ;;  %v847_v5 = vld [vmem:[#allocation10 + $0x38] sm:$0xff]   ;;  %s962_s5 = scalar_lea.vmem %s662_s27, 128 }
 0x25a   :  { %p963_p12 = scmp.ne.s32.totalorder %s662_s27, %s962_s5  ;;  %p968_p0 = scmp.lt.s32.totalorder %s962_s5, %s962_s5 }
 0x25b   :  { %v308_v8 = vpack.c.bf16 %v307_v7, %v306_v6 }
 0x25c   :  { %p969_p1 = por %p968_p0, %p967_p13 }
 0x25d   :  { %777 = vmatmul.mubr.bf16.vlgmr.msra.gmra.mrb[4].mxu1 %v308_v8 }
 0x25e   :  { %782 = vmatprep.mubr.msk.bf16.mxu1 %vm1000_vm0, %v999_v0  ;;  %p970_p2 = pnand %p969_p1, %p963_p12 }
 0x330   :  { %v407_v9 = vpop.f32.mrb[4].mxu1 }
 0x331   :  { %v778_v10 = vpop.f32.mrb[5].mxu1 }
 0x332   :  { %v410_v11 = vpop.f32.mrb[6].mxu1 }
 0x333   :  { %v414_v12 = vpack.c.bf16 %v410_v11, %v407_v9  ;;  %v779_v13 = vpop.f32.mrb[7].mxu1  ;;  %v564_v11 = vsub.s32 6, %v1162_v25 }
 0x335   :  { %781 = vmatpush3.bf16.msra.mxu1 %v414_v12  ;;  %v565_v12 = vrot.slane %v1168_v27, %v564_v11 }
 0x336   :  { %786 = vmatprep.subr.bf16.mxu1 %v999_v0 }
 0x338   :  { %783 = vmatmul.mubr.msk.bf16.vlgmr.msra.gmra.mrb[8].mxu1 %vm222_vm1, %v1147_v15  ;;  %v845_v15 = vld [vmem:[#allocation10 + $0x28] sm:$0xff]  }
 0x339   :  { %788 = vmatprep.mubr.msk.bf16.mxu1 %vm1000_vm0, %v999_v0  ;;  %803 = vmatpush3.bf16.msra.mxu0 %v845_v15 }
 0x33a   :  { %804 = vmatprep.subr.bf16.mxu0 %v999_v0 }
 0x33d   :  { %805 = vmatpush3.bf16.msra.mxu0 %v846_v20 }
 0x33e   :  { %806 = vmatprep.subr.bf16.mxu0 %v999_v0 }
 0x341   :  { %807 = vmatpush3.bf16.msra.mxu0 %v847_v5 }
 0x40b   :  { %v453_v23 = vpop.f32.mrb[8].mxu1 }
 0x40c   :  { %v454_v24 = vadd.f32 %v453_v23, %v418_v22  ;;  %v784_v26 = vpop.f32.mrb[9].mxu1 }
 0x40d   :  { %v456_v28 = vpop.f32.mrb[10].mxu1 }
 0x40e   :  { %v457_v29 = vadd.f32 %v456_v28, %v418_v22  ;;  %v785_v30 = vpop.f32.mrb[11].mxu1  ;;  %v468_v31 = vmul.f32 %v454_v24, %v454_v24 }
 0x410   :  { %v460_v32 = vadd.f32 %v457_v29, %v454_v24  ;;  %v469_v33 = vmul.f32 %v457_v29, %v457_v29 }
 0x412   :  { %v461_v34 = vrot.slane %v460_v32, 4  ;;  %v470_v35 = vadd.f32 %v469_v33, %v468_v31 }
 0x414   :  { %v462_v36 = vadd.f32 %v461_v34, %v460_v32  ;;  %v471_v37 = vrot.slane %v470_v35, 4 }
 0x416   :  { %v463_v38 = vrot.slane %v462_v36, 2  ;;  %v472_v39 = vadd.f32 %v471_v37, %v470_v35 }
 0x418   :  { %v464_v0 = vadd.f32 %v463_v38, %v462_v36  ;;  %v473_v40 = vrot.slane %v472_v39, 2 }
 0x41a   :  { %v465_v41 = vrot.slane %v464_v0, 1  ;;  %v474_v42 = vadd.f32 %v473_v40, %v472_v39 }
 0x41c   :  { %v466_v43 = vadd.f32 %v465_v41, %v464_v0  ;;  %v475_v44 = vrot.slane %v474_v42, 1 }
 0x41e   :  { %v467_v45 = vmul.f32 0.0625, %v466_v43  ;;  %v476_v46 = vadd.f32 %v475_v44, %v474_v42 }
 0x420   :  { %v477_v47 = vmul.f32 0.0625, %v476_v46  ;;  %v478_v48 = vmul.f32 %v467_v45, %v467_v45  ;;  %v484_v49 = vsub.f32 %v454_v24, %v467_v45  ;;  %v485_v50 = vsub.f32 %v457_v29, %v467_v45 }
 0x422   :  { %v479_v51 = vsub.f32 %v477_v47, %v478_v48 }
 0x424   :  { %v480_v52 = vmax.f32 %v479_v51, 0.0 }
 0x426   :  { %v481_v53 = vadd.f32 1e-05, %v480_v52 }
 0x428   :  { %850 = vrsqrt.f32 %v481_v53 }
 0x432   :  { %v851_v56 = vpop.eup %850 }
 0x433   :  { %v483_v57 = vmul.f32 %v851_v56, %v1168_v27 }
 0x435   :  { %v489_v58 = vrot.slane %v483_v57, %v488_v54 }
 0x437   :  { %v490_v60 = vmul.f32 %v489_v58, %v484_v49  ;;  %v491_v61 = vmul.f32 %v489_v58, %v485_v50 }
 0x439   :  { %v497_v62 = vadd.f32 %v495_v59, %v491_v61  ;;  %v496_v63 = vadd.f32 %v495_v59, %v490_v60 }
 0x43b   :  { %v498_v1 = vmax.f32 %v496_v63, 0.0  ;;  %v499_v2 = vmax.f32 %v497_v62, 0.0 }
 0x43d   :  { %v501_v3 = vpack.c.bf16 %v499_v2, %v498_v1 }
 0x43f   :  { %787 = vmatpush3.bf16.msra.mxu1 %v501_v3 }
 0x442   :  { %789 = vmatmul.mubr.msk.bf16.vlgmr.msra.gmra.mrb[12].mxu1 %vm222_vm1, %v500_v4 }
 0x515   :  { %v539_v6 = vpop.f32.mrb[12].mxu1 }
 0x516   :  { %v545_v7 = vpack.c.bf16 %v539_v6, %v539_v6  ;;  %v790_v8 = vpop.f32.mrb[13].mxu1 }
 0x517   :  { %v542_v9 = vpop.f32.mrb[14].mxu1 }
 0x518   :  { %v791_v10 = vpop.f32.mrb[15].mxu1  ;;  %809 = vmatmul.mubr.bf16.vlgmr.msra.gmra.mrb[4].mxu0 %v545_v7 }
 0x5eb   :  { %v648_v13 = vpop.f32.mrb[4].mxu0 }
 0x5ec   :  { %v649_v14 = vadd.f32 %v648_v13, %v565_v12  ;;  %v810_v16 = vpop.f32.mrb[5].mxu0 }
 0x5ed   :  { %v651_v17 = vpop.f32.mrb[6].mxu0 }
 0x5ee   :  { %654 = vst [vmem:[#allocation11] sm:$0xff] %v649_v14  ;;  %v811_v18 = vpop.f32.mrb[7].mxu0 }
 0x5ef   :  { %973 = shalt.err (!%p970_p2)
}
 0x5f0   :  { %s974_s19 = scalar_lea.hbm %s1220_s7, 128 }
 0x5f1   :  { %p975_p3 = scmp.ne.s32.totalorder %s1220_s7, %s974_s19  ;;  %p978_p4 = scmp.lt.u32.totalorder %s974_s19, %s1220_s7 }
 0x5f3   :  { %p980_p5 = pnand %p978_p4, %p975_p3 }
 0x5f5   :  { %983 = shalt.err (!%p980_p5)
}
 0x5f6   :  { %664 = dma.vmem_to_hbm [thread:$0]  %s662_s27, 128, %s1220_s7, [#allocation4]  }
 0x5f7   :  { %990 = dma.done.wait [#allocation4], 128  }
 0x5f8   :  { %991 = vsyncadd [#allocation4], 4294967168 }
 0x5f9   :  { %668 = vsyncpa [#allocation3], 1 }
 0x5fa   :  { %669 = vsyncpa [#allocation6], 1 }
 0x5fb   :  { %670 = vsyncpa [#allocation9], 1 }
 0x5fc   :  { %671 = vsyncpa [#allocation4], 1 }

</bundles_post_ra>
